<compile_context>
chip_gen: v6e
topology: v6e:2x2x1
jax: 0.10.0
libtpu: 0.0.40
codegen_flags: <defaults>
</compile_context>

<pallas_src>
import functools

import jax
import jax.numpy as jnp
from jax.experimental import pallas as pl
from jax.experimental.pallas import tpu as pltpu

ALPHA = 20.0  # matches the PyTorch default alpha=20


# ---- fuzzy-logic primitives (overflow-safe, one transcendental each) ---------
def _sigmoid(z):
    return 0.5 * (jnp.tanh(0.5 * z) + 1.0)


def _gsoftmax(x, y, alpha=ALPHA):
    # == (x*e^{ax} + y*e^{ay}) / (e^{ax} + e^{ay}), rewritten overflow-safely.
    d = x - y
    return y + d * _sigmoid(alpha * d)


def _gsoftmin(x, y, alpha=ALPHA):
    d = x - y
    return y + d * _sigmoid(-alpha * d)


def _gsoftmax_zero(w, alpha=ALPHA):      # generalized_softmax(0, w)
    return w * _sigmoid(alpha * w)


def _gsoftmin_one(s, alpha=ALPHA):       # generalized_softmin(1, s)
    d = 1.0 - s
    return s + d * _sigmoid(-alpha * d)


_OPS = {
    "implication":        lambda x, y: _gsoftmin_one(1.0 - x + y),
    "equivalence":        lambda x, y: 1.0 - jnp.abs(x - y),
    "negation_x1":        lambda x, y: 1.0 - x,
    "weak_conjunction":   _gsoftmin,
    "weak_disjunction":   _gsoftmax,
    "strong_conjunction": lambda x, y: _gsoftmax_zero(x + y - 1.0),
    "strong_disjunction": lambda x, y: _gsoftmin_one(x + y),
}


# ---- Pallas kernel ------------------------------------------------------------
def _logic2_kernel(x_ref, o_ref, *, op_name, half, compute_dtype):
    # Slice the ref first: only half-width views are loaded/upcast (no full-tile temp).
    x1 = x_ref[:, :half].astype(compute_dtype)
    x2 = x_ref[:, half:].astype(compute_dtype)
    y = _OPS[op_name](x1, x2).astype(o_ref.dtype)
    # repeat_input == cat([y, y], -1): two direct stores, no concat intermediate.
    o_ref[:, :half] = y
    o_ref[:, half:] = y


# ---- hardware introspection (safe fallbacks) ----------------------------------
def _vmem_capacity_bytes():
    try:
        return int(pltpu.get_tpu_info().vmem_capacity_bytes)
    except Exception:
        return 64 << 20  # conservative (v7x per-core); safe everywhere


def _pick_compute_dtype(x_dtype):
    if jnp.dtype(x_dtype).itemsize >= 4:
        return jnp.float32
    # sub-32-bit inputs: compute natively on v6e/v7x (bf16 VPU/EUP); upcast on v5e.
    try:
        chip = str(getattr(pltpu.get_tpu_info(), "chip_version", ""))
        if "5" in chip:
            return jnp.float32
        return jnp.bfloat16
    except Exception:
        return jnp.float32


# ---- wrapper -------------------------------------------------------------------
def logic_inference_2arity(x, op_name="weak_conjunction", out_dtype=None,
                           force_pallas=False):
    """x: (B, in_channels) -> (B, in_channels); out_channels == in_channels.

    out_dtype defaults to x.dtype.  (PyTorch returns the op in the input dtype;
    pass out_dtype=jnp.float32 to force an f32 result for bf16 inputs.)
    """
    B, C = x.shape
    assert C % 2 == 0, "in_channels must be even for the 2-arity split"
    half = C // 2

    out_dtype = jnp.dtype(out_dtype) if out_dtype is not None else jnp.dtype(x.dtype)
    in_it = jnp.dtype(x.dtype).itemsize
    out_it = out_dtype.itemsize
    compute_dtype = _pick_compute_dtype(x.dtype)

    # Small-shape fast path: pallas_call has fixed µs-scale launch/DMA overhead;
    # XLA's fused elementwise op wins for sub-vreg workloads.
    if (not force_pallas) and B * C * in_it < (128 << 10):
        x1 = x[:, :half].astype(compute_dtype)
        x2 = x[:, half:].astype(compute_dtype)
        y = _OPS[op_name](x1, x2).astype(out_dtype)
        return jnp.concatenate([y, y], axis=-1)

    # --- per-generation tile / VMEM budgeting ---
    vmem_cap = _vmem_capacity_bytes()
    if vmem_cap >= (128 << 20):          # v5e / v6e: 128 MiB physical VMEM
        block_budget = 16 << 20          # in-tile + out-tile bytes per grid step
        vmem_limit = 64 << 20            # lift v5e's 16 MiB scoped default
    else:                                # v7x: 64 MiB physical per core
        block_budget = 8 << 20
        vmem_limit = 32 << 20

    row_bytes = C * (in_it + out_it) + half * jnp.dtype(compute_dtype).itemsize
    sub = 8 * max(1, 4 // min(in_it, out_it))   # 8 f32 / 16 bf16 / 32 int8 rows

    tb = max(1, block_budget // max(row_bytes, 1))
    if tb >= B:
        if B >= 2 * sub:
            # >= 2 grid steps so both v7x TensorCores get work (and pipelining overlaps).
            tb = ((pl.cdiv(B, 2) + sub - 1) // sub) * sub
        else:
            tb = B
    else:
        tb = max(sub, (tb // sub) * sub)
    tb = min(tb, B)
    grid = (pl.cdiv(B, tb),)

    cost = pl.CostEstimate(
        flops=8 * B * half,
        transcendentals=B * half,
        bytes_accessed=B * C * (in_it + out_it),
    )

    return pl.pallas_call(
        functools.partial(_logic2_kernel, op_name=op_name, half=half,
                          compute_dtype=compute_dtype),
        out_shape=jax.ShapeDtypeStruct((B, C), out_dtype),
        grid=grid,
        in_specs=[pl.BlockSpec((tb, C), lambda i: (i, 0))],
        out_specs=pl.BlockSpec((tb, C), lambda i: (i, 0)),
        compiler_params=pltpu.CompilerParams(
            dimension_semantics=("parallel",),
            vmem_limit_bytes=vmem_limit),
        cost_estimate=cost,
    )(x)


# ---- pure-JAX reference in the *exact* PyTorch exp-form (for validation) -------
def _ref_gsoftmax(x, y, alpha=ALPHA):
    ex, ey = jnp.exp(alpha * x), jnp.exp(alpha * y)
    return (x * ex + y * ey) / (ex + ey)


def _ref_gsoftmin(x, y, alpha=ALPHA):
    return -_ref_gsoftmax(-x, -y, alpha)


_REF_OPS = {
    "implication":        lambda x, y: _ref_gsoftmin(jnp.ones_like(x), 1.0 - x + y),
    "equivalence":        lambda x, y: 1.0 - jnp.abs(x - y),
    "negation_x1":        lambda x, y: 1.0 - x,
    "weak_conjunction":   _ref_gsoftmin,
    "weak_disjunction":   _ref_gsoftmax,
    "strong_conjunction": lambda x, y: _ref_gsoftmax(jnp.zeros_like(x), x + y - 1.0),
    "strong_disjunction": lambda x, y: _ref_gsoftmin(jnp.ones_like(x), x + y),
}


def _reference(x, op_name="weak_conjunction"):
    _, C = x.shape
    half = C // 2
    xf = x.astype(jnp.float32)
    y = _REF_OPS[op_name](xf[:, :half], xf[:, half:])
    return jnp.concatenate([y, y], axis=-1).astype(x.dtype)


if __name__ == "__main__":
    key = jax.random.PRNGKey(0)
    k_small, k_big = jax.random.split(key)

    # 1) Module-implied test shape (test_forward): batch=2, in_channels=out_channels=32.
    B, C = 2, 32
    x_small = jax.random.normal(k_small, (B, C), dtype=jnp.float32)
    out_small = jax.block_until_ready(
        logic_inference_2arity(x_small, op_name="weak_conjunction", force_pallas=True))
    assert out_small.shape == (B, C), out_small.shape
    ref_small = _reference(x_small, "weak_conjunction")
    assert jnp.allclose(out_small, ref_small, atol=1e-5, rtol=1e-5), "small mismatch"

    # 2) Larger lane-aligned shape (half == 128) exercising the tiled multi-step path.
    B2, C2 = 512, 256
    x_big = jax.random.uniform(k_big, (B2, C2), dtype=jnp.float32)  # fuzzy truth values
    out_big = jax.block_until_ready(
        logic_inference_2arity(x_big, op_name="strong_conjunction"))
    assert out_big.shape == (B2, C2), out_big.shape
    ref_big = _reference(x_big, "strong_conjunction")
    assert jnp.allclose(out_big, ref_big, atol=1e-5, rtol=1e-5), "big mismatch"

    print("KERNEL_OK")
</pallas_src>

<mosaic_0001>
module attributes {stable_mosaic.version = 11 : i64} {
  func.func @_logic2_kernel(%arg0: i32, %arg1: memref<2x32xf32, #tpu.memory_space<vmem>>, %arg2: memref<2x32xf32, #tpu.memory_space<vmem>>) attributes {dimension_semantics = [#tpu.dimension_semantics<parallel>], iteration_bounds = array<i64: 1>, scalar_prefetch = 0 : i64, scratch_operands = 0 : i64, tpu.core_type = #tpu.core_type<tc>, window_params = [{transform_indices = @transform_0, window_bounds = array<i64: 2, 32>}, {transform_indices = @transform_1, window_bounds = array<i64: 2, 32>}]} {
    %c0 = arith.constant 0 : index
    %c0_0 = arith.constant 0 : index
    %0 = vector.load %arg1[%c0, %c0_0] : memref<2x32xf32, #tpu.memory_space<vmem>>, vector<2x16xf32>
    %c0_1 = arith.constant 0 : index
    %c16 = arith.constant 16 : index
    %1 = vector.load %arg1[%c0_1, %c16] : memref<2x32xf32, #tpu.memory_space<vmem>>, vector<2x16xf32>
    %2 = arith.subf %0, %1 : vector<2x16xf32>
    %cst = arith.constant -2.000000e+01 : f32
    %3 = vector.broadcast %cst : f32 to vector<2x16xf32>
    %4 = arith.mulf %3, %2 : vector<2x16xf32>
    %cst_2 = arith.constant 5.000000e-01 : f32
    %5 = vector.broadcast %cst_2 : f32 to vector<2x16xf32>
    %6 = arith.mulf %5, %4 : vector<2x16xf32>
    %7 = math.tanh %6 : vector<2x16xf32>
    %cst_3 = arith.constant 1.000000e+00 : f32
    %8 = vector.broadcast %cst_3 : f32 to vector<2x16xf32>
    %9 = arith.addf %7, %8 : vector<2x16xf32>
    %cst_4 = arith.constant 5.000000e-01 : f32
    %10 = vector.broadcast %cst_4 : f32 to vector<2x16xf32>
    %11 = arith.mulf %10, %9 : vector<2x16xf32>
    %12 = arith.mulf %2, %11 : vector<2x16xf32>
    %13 = arith.addf %1, %12 : vector<2x16xf32>
    %c0_5 = arith.constant 0 : index
    %c0_6 = arith.constant 0 : index
    %14 = vector.load %arg2[%c0_5, %c0_6] : memref<2x32xf32, #tpu.memory_space<vmem>>, vector<2x16xf32>
    tpu.vector_store %arg2[%c0_5, %c0_6], %13 {strides = array<i32>} : memref<2x32xf32, #tpu.memory_space<vmem>>, vector<2x16xf32>,
    %c0_7 = arith.constant 0 : index
    %c16_8 = arith.constant 16 : index
    %15 = vector.load %arg2[%c0_7, %c16_8] : memref<2x32xf32, #tpu.memory_space<vmem>>, vector<2x16xf32>
    tpu.vector_store %arg2[%c0_7, %c16_8], %13 {strides = array<i32>} : memref<2x32xf32, #tpu.memory_space<vmem>>, vector<2x16xf32>,
    return
  }
  func.func @transform_0(%arg0: i32) -> (i32, i32) {
    %c0_i32 = arith.constant 0 : i32
    %c0_i32_0 = arith.constant 0 : i32
    return %arg0, %c0_i32 : i32, i32
  }
  func.func @transform_1(%arg0: i32) -> (i32, i32) {
    %c0_i32 = arith.constant 0 : i32
    %c0_i32_0 = arith.constant 0 : i32
    return %arg0, %c0_i32 : i32, i32
  }
}

</mosaic_0001>

<bundles_post_ra>
// kernel: tpu_custom_call.1
= control target key start
LH: loop header
LB: loop body
LE: loop exit
PB: predicated region body
PF: predicated region fallthrough
CT: control target
= control target key end

     0   :  { %6 = vsyncpa [#allocation3], 0  ;;  %s131_s0 = inlined_call_operand.hbm [shape: f32[2,32], index: 0, kind: input, shape index: {}]   ;;  %s132_s1 = inlined_call_operand.hbm [shape: f32[2,32], index: 1, kind: output, shape index: {}]  }
   0x1   :  { %7 = vsyncpa [#allocation4], 0  ;;  %s111_s6 = smov [#allocation2]  }
   0x2   :  { %s14_s7 = sshll.u32 %s111_s6, 4  ;;  %s15_s7 = int_to_ptr.vmem [resolvable:$true] %s14_s7 }
   0x3   :  { %s75_s8 = scalar_lea.vmem %s15_s7, 32  ;;  %p80_p1 = scmp.lt.s32.totalorder %s15_s7, %s15_s7 }
   0x4   :  { %p76_p0 = scmp.ne.s32.totalorder %s15_s7, %s75_s8  ;;  %p81_p2 = scmp.lt.s32.totalorder %s75_s8, %s75_s8 }
   0x6   :  { %p82_p3 = por %p81_p2, %p80_p1 }
   0x8   :  { %p83_p4 = pnand %p82_p3, %p76_p0 }
   0xa   :  { %86 = shalt.err (!%p83_p4)
}
   0xb   :  { %17 = dma.hbm_to_vmem [thread:$0]  %s131_s0, 32, %s15_s7, [#allocation3]  }
   0xc   :  { %107 = dma.done.wait [#allocation3], 32  }
   0xd   :  { %108 = vsyncadd [#allocation3], 4294967264  ;;  %v21_v0 = vld [vmem:[#allocation2] sm:$0x3]  ;;  %s112_s11 = smov 112   ;;  %s113_s12 = smov 16  }
   0xe   :  { %23 = vrot.lane.b32.xlu0 %v21_v0, %s112_s11  ;;  %s114_s0 = smov [#allocation5]   ;;  %vm42_vm0 = vcmask 123904   ;;  %vm44_vm1 = vcmask 255104  }
   0xf   :  { %s52_s13 = sshll.u32 %s114_s0, 4  ;;  %s53_s13 = int_to_ptr.vmem [resolvable:$true] %s52_s13 }
  0x10   :  { %s87_s14 = scalar_lea.vmem %s53_s13, 32  ;;  %p92_p6 = scmp.lt.s32.totalorder %s53_s13, %s53_s13 }
  0x11   :  { %p88_p5 = scmp.ne.s32.totalorder %s53_s13, %s87_s14  ;;  %p93_p7 = scmp.lt.s32.totalorder %s87_s14, %s87_s14 }
  0x13   :  { %p94_p8 = por %p93_p7, %p92_p6 }
  0x15   :  { %p95_p9 = pnand %p94_p8, %p88_p5 }
  0x80   :  { %v24_v1 = vpop.permute.xlu0 %23 }
  0x81   :  { %v26_v2 = vsub.f32 %v21_v0, %v24_v1 }
  0x83   :  { %v27_v3 = vmul.f32 -20.0, %v26_v2 }
  0x85   :  { %v28_v4 = vmul.f32 0.5, %v27_v3 }
  0x87   :  { %65 = vtanh.f32 %v28_v4 }
  0x94   :  { %v66_v5 = vpop.eup %65 }
  0x95   :  { %v30_v6 = vadd.f32 1.0, %v66_v5 }
  0x97   :  { %v31_v7 = vmul.f32 0.5, %v30_v6 }
  0x99   :  { %v32_v8 = vmul.f32 %v31_v7, %v26_v2 }
  0x9b   :  { %34 = vrot.lane.b32.xlu0 %v32_v8, %s113_s12 }
 0x10d   :  { %v35_v9 = vpop.permute.xlu0 %34 }
 0x10e   :  { %v37_v10 = vadd.f32 %v35_v9, %v21_v0 }
 0x110   :  { %39 = vrot.lane.b32.xlu1 %v37_v10, %s112_s11 }
 0x182   :  { %v40_v11 = vpop.permute.xlu1 %39 }
 0x183   :  { %43 = vst.msk [vmem:[#allocation5] sm:$0x3] %vm42_vm0, %v40_v11 }
 0x184   :  { %45 = vst.msk [vmem:[#allocation5] sm:$0x3] %vm44_vm1, %v37_v10 }
 0x185   :  { %98 = shalt.err (!%p95_p9)
}
 0x186   :  { %55 = dma.vmem_to_hbm [thread:$0]  %s53_s13, 32, %s132_s1, [#allocation4]  }
 0x187   :  { %109 = dma.done.wait [#allocation4], 32  }
 0x188   :  { %110 = vsyncadd [#allocation4], 4294967264 }
 0x189   :  { %59 = vsyncpa [#allocation3], 1 }
 0x18a   :  { %60 = vsyncpa [#allocation4], 1 }

</bundles_post_ra>
